<compile_context>
chip_gen: v7x
topology: tpu7x:2x2x1
jax: 0.10.0
libtpu: 0.0.40
codegen_flags: <defaults>
</compile_context>

<pallas_src>
import functools

import jax
import jax.numpy as jnp
from jax.experimental import pallas as pl
from jax.experimental.pallas import tpu as pltpu

HIDDEN = 128


def _round_up(n, m):
    return (n + m - 1) // m * m


def dqn_kernel(x_ref, w1_ref, b1_ref, w2_ref, b2_ref, w3_ref, b3_ref, o_ref):
    # One batch tile per grid step; weights/biases are resident in VMEM.
    x = x_ref[...]                                                     # [tb, K]   (bf16)
    h1 = jnp.dot(x, w1_ref[...], preferred_element_type=jnp.float32)   # [tb, 128] (f32 acc)
    h1 = jnp.maximum(h1 + b1_ref[...], 0.0)                            # fused bias+ReLU (f32)
    h2 = jnp.dot(h1.astype(w2_ref.dtype), w2_ref[...],
                 preferred_element_type=jnp.float32)                   # [tb, 128]
    h2 = jnp.maximum(h2 + b2_ref[...], 0.0)
    out = jnp.dot(h2.astype(w3_ref.dtype), w3_ref[...],
                  preferred_element_type=jnp.float32)                  # [tb, n_pad]
    o_ref[...] = (out + b3_ref[...]).astype(o_ref.dtype)


@functools.partial(jax.jit, static_argnames=("output_dim", "matmul_dtype", "block_b"))
def dqn_forward(x, params, output_dim, matmul_dtype=jnp.bfloat16, block_b=4096):
    """y = fc3(relu(fc2(relu(fc1(x))))); returns [B, output_dim] float32."""
    w1, b1, w2, b2, w3, b3 = params      # w1:[K8,128] w2:[128,128] w3:[128,N8] b*:[1,*]
    B, d_in = x.shape
    k_dim = w1.shape[0]                  # d_in rounded up to a multiple of 8 (zero rows)
    n_pad = w3.shape[1]                  # output_dim rounded up to a multiple of 8 (zero cols)

    # K padding only to the sublane multiple the params were stored with (no-op for d_in=16).
    if d_in < k_dim:
        x = jnp.pad(x, ((0, 0), (0, k_dim - d_in)))

    # Matmul operands in matmul_dtype (bf16 default, MXU-native on all gens);
    # biases / accumulation / epilogue stay f32.
    x = x.astype(matmul_dtype)
    w1c, w2c, w3c = (w.astype(matmul_dtype) for w in (w1, w2, w3))

    # Large batch tile (multiple of 8) amortizes the ~0.35 us/step overhead.
    # tb=4096 keeps pipelined buffers at ~6-7 MiB, under v5e's 16 MiB default scoped VMEM.
    # The grid handles a ragged last block (masked DMA), so no padding to a multiple of tb.
    tb = min(_round_up(block_b, 8), _round_up(max(B, 1), 8))
    grid = (pl.cdiv(B, tb),)

    resident = lambda shape: pl.BlockSpec(shape, lambda i: (0, 0))  # stays in VMEM

    out = pl.pallas_call(
        dqn_kernel,
        out_shape=jax.ShapeDtypeStruct((B, n_pad), jnp.float32),
        grid=grid,
        in_specs=[
            pl.BlockSpec((tb, k_dim), lambda i: (i, 0)),   # activation stream
            resident(w1c.shape), resident(b1.shape),
            resident(w2c.shape), resident(b2.shape),
            resident(w3c.shape), resident(b3.shape),
        ],
        out_specs=pl.BlockSpec((tb, n_pad), lambda i: (i, 0)),
        compiler_params=pltpu.CompilerParams(
            dimension_semantics=("parallel",),   # batch axis -> both TCs on v7x
        ),
    )(x, w1c, b1, w2c, b2, w3c, b3)

    # Strip output-lane padding (fused inside jit; reads only n_pad=8 lanes/row).
    return out[:, :output_dim]


def init_params(key, input_dim, output_dim):
    """PyTorch-Linear-style U(-1/sqrt(fan_in), 1/sqrt(fan_in)) init, stored as
    [in, out] (y = x @ W + b).  K and N are padded only to multiples of 8
    (sublane alignment) with ZERO rows/cols so padded math stays exact."""
    ks = jax.random.split(key, 6)
    k_pad = _round_up(input_dim, 8)
    n_pad = _round_up(output_dim, 8)

    def linear(kw, kb, fan_in, fan_out, fan_in_pad, fan_out_pad):
        bound = 1.0 / jnp.sqrt(jnp.float32(fan_in))
        w = jax.random.uniform(kw, (fan_in, fan_out), jnp.float32, -bound, bound)
        b = jax.random.uniform(kb, (1, fan_out), jnp.float32, -bound, bound)
        w = jnp.pad(w, ((0, fan_in_pad - fan_in), (0, fan_out_pad - fan_out)))
        b = jnp.pad(b, ((0, 0), (0, fan_out_pad - fan_out)))
        return w, b

    w1, b1 = linear(ks[0], ks[1], input_dim, HIDDEN, k_pad, HIDDEN)
    w2, b2 = linear(ks[2], ks[3], HIDDEN, HIDDEN, HIDDEN, HIDDEN)
    w3, b3 = linear(ks[4], ks[5], HIDDEN, output_dim, HIDDEN, n_pad)
    return (w1, b1, w2, b2, w3, b3)


if __name__ == "__main__":
    key = jax.random.PRNGKey(0)
    k_params, k_x = jax.random.split(key)

    batch, input_dim, output_dim = 8, 16, 4
    params = init_params(k_params, input_dim, output_dim)
    x = jax.random.normal(k_x, (batch, input_dim), jnp.float32)

    # Plain-JAX reference (padding rows/cols are zero, so padded math is exact).
    w1, b1, w2, b2, w3, b3 = params
    ref = jnp.maximum(x @ w1[:input_dim] + b1, 0.0)
    ref = jnp.maximum(ref @ w2 + b2, 0.0)
    ref = (ref @ w3 + b3)[:, :output_dim]

    # f32 matmul path (exact check).
    out_f32 = dqn_forward(x, params, output_dim, matmul_dtype=jnp.float32)
    jax.block_until_ready(out_f32)
    assert out_f32.shape == (batch, output_dim)
    assert jnp.allclose(out_f32, ref, atol=1e-5, rtol=1e-5)

    # Default bf16 activation/weight stream (f32 accumulation + epilogue).
    out_bf16 = dqn_forward(x, params, output_dim)
    jax.block_until_ready(out_bf16)
    assert out_bf16.shape == (batch, output_dim)
    assert jnp.allclose(out_bf16, ref, atol=1e-1, rtol=1e-1)

    print("KERNEL_OK")
</pallas_src>

<mosaic_0001>
module attributes {stable_mosaic.version = 11 : i64} {
  func.func @dqn_kernel(%arg0: i32, %arg1: memref<8x16xf32, #tpu.memory_space<vmem>>, %arg2: memref<16x128xf32, #tpu.memory_space<vmem>>, %arg3: memref<1x128xf32, #tpu.memory_space<vmem>>, %arg4: memref<128x128xf32, #tpu.memory_space<vmem>>, %arg5: memref<1x128xf32, #tpu.memory_space<vmem>>, %arg6: memref<128x8xf32, #tpu.memory_space<vmem>>, %arg7: memref<1x8xf32, #tpu.memory_space<vmem>>, %arg8: memref<8x8xf32, #tpu.memory_space<vmem>>) attributes {dimension_semantics = [#tpu.dimension_semantics<parallel>], iteration_bounds = array<i64: 1>, scalar_prefetch = 0 : i64, scratch_operands = 0 : i64, tpu.core_type = #tpu.core_type<tc>, window_params = [{transform_indices = @transform_0, window_bounds = array<i64: 8, 16>}, {pipeline_mode = #tpu.pipeline_mode<synchronous>, transform_indices = @transform_1, window_bounds = array<i64: 16, 128>}, {pipeline_mode = #tpu.pipeline_mode<synchronous>, transform_indices = @transform_2, window_bounds = array<i64: 1, 128>}, {pipeline_mode = #tpu.pipeline_mode<synchronous>, transform_indices = @transform_3, window_bounds = array<i64: 128, 128>}, {pipeline_mode = #tpu.pipeline_mode<synchronous>, transform_indices = @transform_4, window_bounds = array<i64: 1, 128>}, {pipeline_mode = #tpu.pipeline_mode<synchronous>, transform_indices = @transform_5, window_bounds = array<i64: 128, 8>}, {pipeline_mode = #tpu.pipeline_mode<synchronous>, transform_indices = @transform_6, window_bounds = array<i64: 1, 8>}, {transform_indices = @transform_7, window_bounds = array<i64: 8, 8>}]} {
    %c0 = arith.constant 0 : index
    %c0_0 = arith.constant 0 : index
    %0 = vector.load %arg1[%c0, %c0_0] : memref<8x16xf32, #tpu.memory_space<vmem>>, vector<8x16xf32>
    %c0_1 = arith.constant 0 : index
    %c0_2 = arith.constant 0 : index
    %1 = vector.load %arg2[%c0_1, %c0_2] : memref<16x128xf32, #tpu.memory_space<vmem>>, vector<16x128xf32>
    %cst = arith.constant dense<0.000000e+00> : vector<8x128xf32>
    %2 = tpu.matmul %0, %1, %cst {dimension_numbers = #tpu.dot_dimension_numbers<[1], [0], [0], [1], [0, 0, 1, 1], [], []>} : vector<8x16xf32>, vector<16x128xf32>, vector<8x128xf32> -> vector<8x128xf32>
    %c0_3 = arith.constant 0 : index
    %c0_4 = arith.constant 0 : index
    %3 = vector.load %arg3[%c0_3, %c0_4] : memref<1x128xf32, #tpu.memory_space<vmem>>, vector<1x128xf32>
    %4 = vector.broadcast %3 : vector<1x128xf32> to vector<8x128xf32>
    %5 = arith.addf %2, %4 : vector<8x128xf32>
    %cst_5 = arith.constant 0.000000e+00 : f32
    %6 = vector.broadcast %cst_5 : f32 to vector<8x128xf32>
    %7 = arith.maximumf %5, %6 : vector<8x128xf32>
    %c0_6 = arith.constant 0 : index
    %c0_7 = arith.constant 0 : index
    %8 = vector.load %arg4[%c0_6, %c0_7] : memref<128x128xf32, #tpu.memory_space<vmem>>, vector<128x128xf32>
    %cst_8 = arith.constant dense<0.000000e+00> : vector<8x128xf32>
    %9 = tpu.matmul %7, %8, %cst_8 {dimension_numbers = #tpu.dot_dimension_numbers<[1], [0], [0], [1], [0, 0, 1, 1], [], []>} : vector<8x128xf32>, vector<128x128xf32>, vector<8x128xf32> -> vector<8x128xf32>
    %c0_9 = arith.constant 0 : index
    %c0_10 = arith.constant 0 : index
    %10 = vector.load %arg5[%c0_9, %c0_10] : memref<1x128xf32, #tpu.memory_space<vmem>>, vector<1x128xf32>
    %11 = vector.broadcast %10 : vector<1x128xf32> to vector<8x128xf32>
    %12 = arith.addf %9, %11 : vector<8x128xf32>
    %cst_11 = arith.constant 0.000000e+00 : f32
    %13 = vector.broadcast %cst_11 : f32 to vector<8x128xf32>
    %14 = arith.maximumf %12, %13 : vector<8x128xf32>
    %c0_12 = arith.constant 0 : index
    %c0_13 = arith.constant 0 : index
    %15 = vector.load %arg6[%c0_12, %c0_13] : memref<128x8xf32, #tpu.memory_space<vmem>>, vector<128x8xf32>
    %cst_14 = arith.constant dense<0.000000e+00> : vector<8x8xf32>
    %16 = tpu.matmul %14, %15, %cst_14 {dimension_numbers = #tpu.dot_dimension_numbers<[1], [0], [0], [1], [0, 0, 1, 1], [], []>} : vector<8x128xf32>, vector<128x8xf32>, vector<8x8xf32> -> vector<8x8xf32>
    %c0_15 = arith.constant 0 : index
    %c0_16 = arith.constant 0 : index
    %17 = vector.load %arg7[%c0_15, %c0_16] : memref<1x8xf32, #tpu.memory_space<vmem>>, vector<1x8xf32>
    %18 = vector.broadcast %17 : vector<1x8xf32> to vector<8x8xf32>
    %19 = arith.addf %16, %18 : vector<8x8xf32>
    %c0_17 = arith.constant 0 : index
    %c0_18 = arith.constant 0 : index
    %20 = vector.load %arg8[%c0_17, %c0_18] : memref<8x8xf32, #tpu.memory_space<vmem>>, vector<8x8xf32>
    tpu.vector_store %arg8[%c0_17, %c0_18], %19 {strides = array<i32>} : memref<8x8xf32, #tpu.memory_space<vmem>>, vector<8x8xf32>,
    return
  }
  func.func @transform_0(%arg0: i32) -> (i32, i32) {
    %c0_i32 = arith.constant 0 : i32
    %c0_i32_0 = arith.constant 0 : i32
    return %arg0, %c0_i32 : i32, i32
  }
  func.func @transform_1(%arg0: i32) -> (i32, i32) {
    %c0_i32 = arith.constant 0 : i32
    %c0_i32_0 = arith.constant 0 : i32
    %c0_i32_1 = arith.constant 0 : i32
    return %c0_i32, %c0_i32_0 : i32, i32
  }
  func.func @transform_2(%arg0: i32) -> (i32, i32) {
    %c0_i32 = arith.constant 0 : i32
    %c0_i32_0 = arith.constant 0 : i32
    %c0_i32_1 = arith.constant 0 : i32
    return %c0_i32, %c0_i32_0 : i32, i32
  }
  func.func @transform_3(%arg0: i32) -> (i32, i32) {
    %c0_i32 = arith.constant 0 : i32
    %c0_i32_0 = arith.constant 0 : i32
    %c0_i32_1 = arith.constant 0 : i32
    return %c0_i32, %c0_i32_0 : i32, i32
  }
  func.func @transform_4(%arg0: i32) -> (i32, i32) {
    %c0_i32 = arith.constant 0 : i32
    %c0_i32_0 = arith.constant 0 : i32
    %c0_i32_1 = arith.constant 0 : i32
    return %c0_i32, %c0_i32_0 : i32, i32
  }
  func.func @transform_5(%arg0: i32) -> (i32, i32) {
    %c0_i32 = arith.constant 0 : i32
    %c0_i32_0 = arith.constant 0 : i32
    %c0_i32_1 = arith.constant 0 : i32
    return %c0_i32, %c0_i32_0 : i32, i32
  }
  func.func @transform_6(%arg0: i32) -> (i32, i32) {
    %c0_i32 = arith.constant 0 : i32
    %c0_i32_0 = arith.constant 0 : i32
    %c0_i32_1 = arith.constant 0 : i32
    return %c0_i32, %c0_i32_0 : i32, i32
  }
  func.func @transform_7(%arg0: i32) -> (i32, i32) {
    %c0_i32 = arith.constant 0 : i32
    %c0_i32_0 = arith.constant 0 : i32
    return %arg0, %c0_i32 : i32, i32
  }
}

</mosaic_0001>

<bundles_post_ra>
// kernel: dqn_forward.1
= control target key start
LH: loop header
LB: loop body
LE: loop exit
PB: predicated region body
PF: predicated region fallthrough
CT: control target
= control target key end

     0   :  { %12 = vsyncpa [#allocation3], 0  ;;  %s514_s24 = smov [#allocation2]   ;;  %s704_s0 = inlined_call_operand.hbm [shape: f32[8,16], index: 0, kind: input, shape index: {}]   ;;  %s705_s1 = inlined_call_operand.vmem [shape: f32[16,128], index: 1, kind: input, shape index: {}]   ;;  %s706_s2 = inlined_call_operand.vmem [shape: f32[1,128], index: 2, kind: input, shape index: {}]   ;;  %s707_s3 = inlined_call_operand.vmem [shape: f32[128,128], index: 3, kind: input, shape index: {}]   ;;  %s708_s4 = inlined_call_operand.vmem [shape: f32[1,128], index: 4, kind: input, shape index: {}]   ;;  %s709_s5 = inlined_call_operand.vmem [shape: f32[128,8], index: 5, kind: input, shape index: {}]   ;;  %s710_s6 = inlined_call_operand.vmem [shape: f32[1,8], index: 6, kind: input, shape index: {}]   ;;  %s711_s7 = inlined_call_operand.vmem [shape: f32[8,8], index: 7, kind: output, shape index: {}]  }
   0x1   :  { %s19_s25 = sshll.u32 %s514_s24, 4  ;;  %s490_s28 = scalar_lea.hbm %s704_s0, 128  ;;  %s20_s25 = int_to_ptr.vmem [resolvable:$true] %s19_s25 }
   0x2   :  { %p491_p0 = scmp.ne.s32.totalorder %s704_s0, %s490_s28  ;;  %p494_p1 = scmp.lt.u32.totalorder %s490_s28, %s704_s0 }
   0x4   :  { %p496_p2 = pnand %p494_p1, %p491_p0 }
   0x6   :  { %499 = shalt.err (!%p496_p2)
}
   0x7   :  { %s500_s10 = scalar_lea.vmem %s20_s25, 128  ;;  %p505_p4 = scmp.lt.s32.totalorder %s20_s25, %s20_s25 }
   0x8   :  { %p501_p3 = scmp.ne.s32.totalorder %s20_s25, %s500_s10  ;;  %p506_p5 = scmp.lt.s32.totalorder %s500_s10, %s500_s10 }
   0xa   :  { %p507_p6 = por %p506_p5, %p505_p4 }
   0xc   :  { %p508_p7 = pnand %p507_p6, %p501_p3 }
   0xe   :  { %511 = shalt.err (!%p508_p7)
}
   0xf   :  { %22 = dma.hbm_to_vmem [thread:$0]  %s704_s0, 128, %s20_s25, [#allocation3]  }
  0x10   :  { %512 = dma.done.wait [#allocation3], 128  }
  0x11   :  { %513 = vsyncadd [#allocation3], 4294967168  ;;  %v515_v0 = vmov 0.0|0.0   ;;  %vm516_vm0 = vmmov 0   ;;  %v517_v1 = vmov 0.0   ;;  %v39_v2 = vld [vmem:[%s705_s1] sm:$0xff] }
  0x12   :  { %435 = vmatprep.subr.bf16.mxu0 %v515_v0  ;;  %362 = vmatprep.mubr.msk.f32.mxu0 %vm516_vm0, %v517_v1  ;;  %v40_v3 = vld [vmem:[%s705_s1 + $0x8] sm:$0xff]  ;;  %v123_v5 = vld [vmem:[%s707_s3] sm:$0xff]  ;;  %v125_v7 = vld [vmem:[%s707_s3 + $0x10] sm:$0xff]  ;;  %vm48_vm1 = vcmask 130048   ;;  %vm310_vm2 = vcmask 64512  }
  0x13   :  { %438 = vmatprep.subr.bf16.mxu1 %v515_v0  ;;  %397 = vmatprep.mubr.msk.f32.mxu1 %vm516_vm0, %v517_v1  ;;  %v436_v4 = vpack.c.bf16 %v40_v3, %v39_v2  ;;  %v124_v6 = vld [vmem:[%s707_s3 + $0x8] sm:$0xff]  ;;  %v126_v9 = vld [vmem:[%s707_s3 + $0x18] sm:$0xff]  ;;  %v38_v10 = vld [vmem:[#allocation2] sm:$0xff] }
  0x14   :  { %v439_v8 = vpack.c.bf16 %v124_v6, %v123_v5  ;;  %v442_v11 = vpack.c.bf16 %v126_v9, %v125_v7  ;;  %v127_v12 = vld [vmem:[%s707_s3 + $0x20] sm:$0xff]  ;;  %v128_v13 = vld [vmem:[%s707_s3 + $0x28] sm:$0xff]  ;;  %v129_v15 = vld [vmem:[%s707_s3 + $0x30] sm:$0xff] }
  0x15   :  { %437 = vmatpush3.bf16.msra.mxu0 %v436_v4  ;;  %v445_v14 = vpack.c.bf16 %v128_v13, %v127_v12  ;;  %v130_v16 = vld [vmem:[%s707_s3 + $0x38] sm:$0xff]  ;;  %v131_v18 = vld [vmem:[%s707_s3 + $0x40] sm:$0xff]  ;;  %v132_v19 = vld [vmem:[%s707_s3 + $0x48] sm:$0xff] }
  0x16   :  { %440 = vmatpush3.bf16.msra.mxu1 %v439_v8  ;;  %462 = vmatprep.subr.bf16.mxu0 %v515_v0  ;;  %v448_v17 = vpack.c.bf16 %v130_v16, %v129_v15  ;;  %v451_v20 = vpack.c.bf16 %v132_v19, %v131_v18  ;;  %v133_v21 = vld [vmem:[%s707_s3 + $0x50] sm:$0xff]  ;;  %v134_v22 = vld [vmem:[%s707_s3 + $0x58] sm:$0xff]  ;;  %v135_v24 = vld [vmem:[%s707_s3 + $0x60] sm:$0xff] }
  0x17   :  { %441 = vmatprep.subr.bf16.mxu1 %v515_v0  ;;  %v454_v23 = vpack.c.bf16 %v134_v22, %v133_v21  ;;  %v136_v25 = vld [vmem:[%s707_s3 + $0x68] sm:$0xff]  ;;  %v137_v27 = vld [vmem:[%s707_s3 + $0x70] sm:$0xff]  ;;  %v138_v28 = vld [vmem:[%s707_s3 + $0x78] sm:$0xff] }
  0x18   :  { %363 = vmatmul.mubr.msk.f32.vlgmr.msra.gmra.mrb[0].mxu0 %vm48_vm1, %v38_v10  ;;  %v457_v26 = vpack.c.bf16 %v136_v25, %v135_v24  ;;  %v460_v29 = vpack.c.bf16 %v138_v28, %v137_v27  ;;  %v217_v30 = vld [vmem:[%s709_s5] sm:$0xff]  ;;  %v218_v31 = vld [vmem:[%s709_s5 + $0x8] sm:$0xff]  ;;  %v219_v32 = vld [vmem:[%s709_s5 + $0x10] sm:$0xff] }
  0x19   :  { %432 = vmatprep.mubr.msk.f32.mxu0 %vm516_vm0, %v517_v1  ;;  %v463_v33 = vpack.c.bf16 %v218_v31, %v217_v30  ;;  %v220_v34 = vld [vmem:[%s709_s5 + $0x18] sm:$0xff]  ;;  %v221_v36 = vld [vmem:[%s709_s5 + $0x20] sm:$0xff]  ;;  %v222_v37 = vld [vmem:[%s709_s5 + $0x28] sm:$0xff] }
  0x1a   :  { %443 = vmatpush3.bf16.msra.mxu1 %v442_v11  ;;  %v466_v35 = vpack.c.bf16 %v220_v34, %v219_v32  ;;  %v469_v38 = vpack.c.bf16 %v222_v37, %v221_v36  ;;  %v223_v39 = vld [vmem:[%s709_s5 + $0x30] sm:$0xff]  ;;  %v224_v40 = vld [vmem:[%s709_s5 + $0x38] sm:$0xff]  ;;  %v225_v42 = vld [vmem:[%s709_s5 + $0x40] sm:$0xff] }
  0x1b   :  { %444 = vmatprep.subr.bf16.mxu1 %v515_v0  ;;  %464 = vmatpush3.bf16.msra.mxu0 %v463_v33  ;;  %v472_v41 = vpack.c.bf16 %v224_v40, %v223_v39  ;;  %v226_v43 = vld [vmem:[%s709_s5 + $0x48] sm:$0xff]  ;;  %v227_v45 = vld [vmem:[%s709_s5 + $0x50] sm:$0xff]  ;;  %v228_v46 = vld [vmem:[%s709_s5 + $0x58] sm:$0xff] }
  0x1c   :  { %465 = vmatprep.subr.bf16.mxu0 %v515_v0  ;;  %v475_v44 = vpack.c.bf16 %v226_v43, %v225_v42  ;;  %v478_v47 = vpack.c.bf16 %v228_v46, %v227_v45  ;;  %v229_v48 = vld [vmem:[%s709_s5 + $0x60] sm:$0xff]  ;;  %v230_v49 = vld [vmem:[%s709_s5 + $0x68] sm:$0xff]  ;;  %v231_v56 = vld [vmem:[%s709_s5 + $0x70] sm:$0xff] }
  0x1d   :  { %v481_v50 = vpack.c.bf16 %v230_v49, %v229_v48  ;;  %v317_v51 = vld [vmem:[%s706_s2] ss:$0 sm:$0xff]  ;;  %v232_v57 = vld [vmem:[%s709_s5 + $0x78] sm:$0xff] }
  0x1e   :  { %446 = vmatpush3.bf16.msra.mxu1 %v445_v14  ;;  %v484_v58 = vpack.c.bf16 %v232_v57, %v231_v56  ;;  %v319_v59 = vld [vmem:[%s708_s4] ss:$0 sm:$0xff] }
  0x1f   :  { %447 = vmatprep.subr.bf16.mxu1 %v515_v0  ;;  %467 = vmatpush3.bf16.msra.mxu0 %v466_v35 }
  0x20   :  { %468 = vmatprep.subr.bf16.mxu0 %v515_v0 }
  0x22   :  { %449 = vmatpush3.bf16.msra.mxu1 %v448_v17 }
  0x23   :  { %450 = vmatprep.subr.bf16.mxu1 %v515_v0  ;;  %470 = vmatpush3.bf16.msra.mxu0 %v469_v38 }
  0x24   :  { %471 = vmatprep.subr.bf16.mxu0 %v515_v0 }
  0x26   :  { %452 = vmatpush3.bf16.msra.mxu1 %v451_v20 }
  0x27   :  { %453 = vmatprep.subr.bf16.mxu1 %v515_v0  ;;  %473 = vmatpush3.bf16.msra.mxu0 %v472_v41 }
  0x28   :  { %474 = vmatprep.subr.bf16.mxu0 %v515_v0 }
  0x2a   :  { %455 = vmatpush3.bf16.msra.mxu1 %v454_v23 }
  0x2b   :  { %456 = vmatprep.subr.bf16.mxu1 %v515_v0  ;;  %476 = vmatpush3.bf16.msra.mxu0 %v475_v44 }
  0x2c   :  { %477 = vmatprep.subr.bf16.mxu0 %v515_v0 }
  0x2e   :  { %458 = vmatpush3.bf16.msra.mxu1 %v457_v26 }
  0x2f   :  { %459 = vmatprep.subr.bf16.mxu1 %v515_v0  ;;  %479 = vmatpush3.bf16.msra.mxu0 %v478_v47 }
  0x30   :  { %480 = vmatprep.subr.bf16.mxu0 %v515_v0 }
  0x32   :  { %461 = vmatpush3.bf16.msra.mxu1 %v460_v29 }
  0x33   :  { %482 = vmatpush3.bf16.msra.mxu0 %v481_v50 }
  0x34   :  { %483 = vmatprep.subr.bf16.mxu0 %v515_v0  ;;  %v320_v0 = vld [vmem:[%s710_s6] ss:$0 sm:$0xff] }
  0x37   :  { %485 = vmatpush3.bf16.msra.mxu0 %v484_v58 }
  0xeb   :  { %v118_v52 = vpop.f32.mrb[0].mxu0 }
  0xec   :  { %v119_v53 = vadd.f32 %v317_v51, %v118_v52  ;;  %v364_v54 = vpop.f32.mrb[1].mxu0 }
  0xee   :  { %v122_v55 = vmax.f32 %v119_v53, 0.0 }
  0xf0   :  { %398 = vmatmul.mubr.f32.vlgmr.msra.gmra.mrb[0].mxu1 %v122_v55 }
 0x1c3   :  { %v212_v60 = vpop.f32.mrb[0].mxu1 }
 0x1c4   :  { %v213_v61 = vadd.f32 %v319_v59, %v212_v60  ;;  %v399_v62 = vpop.f32.mrb[1].mxu1 }
 0x1c6   :  { %v216_v63 = vmax.f32 %v213_v61, 0.0 }
 0x1c8   :  { %433 = vmatmul.mubr.f32.vlgmr.msra.gmra.mrb[2].mxu0 %v216_v63 }
 0x29b   :  { %v306_v1 = vpop.f32.mrb[2].mxu0 }
 0x29c   :  { %v307_v2 = vadd.f32 %v320_v0, %v306_v1  ;;  %v434_v3 = vpop.f32.mrb[3].mxu0 }
 0x29e   :  { %311 = vst.msk [vmem:[%s711_s7] sm:$0xff] %vm310_vm2, %v307_v2 }
 0x29f   :  { %316 = vsyncpa [#allocation3], 1 }

</bundles_post_ra>
